<compile_context>
chip_gen: v6e
topology: v6e:2x2x1
jax: 0.10.0
libtpu: 0.0.40
codegen_flags: <defaults>
</compile_context>

<pallas_src>
import jax
import jax.numpy as jnp
from jax.experimental import pallas as pl
from jax.experimental.pallas import tpu as pltpu


_LANE = 128
_MAX_TR = 4096          # rows per tile -> 4096 * 128 * 4 B = 2 MiB per f32 block


def _round_up(n, m):
    return ((n + m - 1) // m) * m


# ----------------------------- kernels ------------------------------------


def _sigmoid_fwd_kernel(x_ref, y_ref, part_ref):
    """forward: y = sigmoid(x); per-tile partial of -softplus(x)-softplus(-x)."""
    tr = x_ref.shape[1]
    x = x_ref[...].astype(jnp.float32)            # (1, tr, 128)

    ax = jnp.abs(x)
    t = jnp.exp(-ax)                              # shared by sigmoid and ldj
    r = 1.0 / (1.0 + t)
    y = jnp.where(x >= 0, r, t * r)               # numerically stable sigmoid
    y_ref[...] = y.astype(y_ref.dtype)

    # -softplus(x) - softplus(-x) == -(|x| + 2*log1p(exp(-|x|)))
    ldj = -(ax + 2.0 * jnp.log1p(t))
    # sublane-group fold: (tr, 128) -> (tr//8, 8, 128) -> (8, 128) dense partial
    part = ldj.reshape(tr // 8, 8, _LANE).sum(axis=0)
    part_ref[...] = part.reshape(1, 1, 8, _LANE)


def _sigmoid_rev_kernel(x_ref, y_ref, part_ref):
    """reverse: y = logit(x); per-tile partial of -log(x) - log(1-x)."""
    tr = x_ref.shape[1]
    x = x_ref[...].astype(jnp.float32)

    lx = jnp.log(x)
    l1mx = jnp.log1p(-x)                          # stable log(1 - x)
    y_ref[...] = (lx - l1mx).astype(y_ref.dtype)  # == -log(1/x - 1)

    ldj = -(lx + l1mx)
    part = ldj.reshape(tr // 8, 8, _LANE).sum(axis=0)
    part_ref[...] = part.reshape(1, 1, 8, _LANE)


# ----------------------------- wrapper -------------------------------------


def sigmoid_flow(x, sldj, reverse=False):
    """Pallas implementation of Sigmoid.forward(x, sldj, reverse).

    x:    (B, C, H, W) float32
    sldj: (B,)         float32
    returns (y with x's shape, sldj (B,))
    """
    B = x.shape[0]
    D = 1
    for s in x.shape[1:]:
        D *= s

    # sublane/lane-dense layout: per-sample rows of 128 lanes, padded as needed.
    R0 = pl.cdiv(D, _LANE)
    tr = min(_MAX_TR, _round_up(R0, 8))           # rows per tile, multiple of 8
    R = _round_up(R0, tr)                         # padded rows so R % tr == 0
    n_j = R // tr
    D_pad = R * _LANE
    n_pad = D_pad - D                             # padded elements per sample

    pad_val = 0.5 if reverse else 0.0             # finite y / ldj at the pad value
    x2 = x.reshape(B, D)
    if n_pad:
        x2 = jnp.pad(x2, ((0, 0), (0, n_pad)), constant_values=pad_val)
    x3 = x2.reshape(B, R, _LANE)

    kernel = _sigmoid_rev_kernel if reverse else _sigmoid_fwd_kernel

    y3, part = pl.pallas_call(
        kernel,
        out_shape=(
            jax.ShapeDtypeStruct((B, R, _LANE), x.dtype),
            jax.ShapeDtypeStruct((B, n_j, 8, _LANE), jnp.float32),
        ),
        grid_spec=pltpu.PrefetchScalarGridSpec(
            num_scalar_prefetch=0,
            grid=(B, n_j),
            in_specs=[
                pl.BlockSpec((1, tr, _LANE), lambda b, j: (b, j, 0)),
            ],
            out_specs=[
                pl.BlockSpec((1, tr, _LANE), lambda b, j: (b, j, 0)),
                pl.BlockSpec((1, 1, 8, _LANE), lambda b, j: (b, j, 0, 0)),
            ],
        ),
        compiler_params=pltpu.CompilerParams(
            # every output block is written exactly once -> both axes parallel
            dimension_semantics=("parallel", "parallel"),
            vmem_limit_bytes=32 * 1024 * 1024,
        ),
    )(x3)

    y = y3.reshape(B, D_pad)[:, :D].reshape(x.shape)

    ldj = part.reshape(B, -1).sum(axis=-1)
    if n_pad:
        pv = jnp.float32(pad_val)
        if reverse:
            c = -(jnp.log(pv) + jnp.log1p(-pv))
        else:
            c = -(jnp.abs(pv) + 2.0 * jnp.log1p(jnp.exp(-jnp.abs(pv))))
        ldj = ldj - jnp.float32(n_pad) * c        # remove padded contributions

    return y, sldj.astype(jnp.float32) + ldj


# ----------------------------- reference -----------------------------------


def _reference(x, sldj, reverse=False):
    if not reverse:
        y = jax.nn.sigmoid(x)
        ldj = -jax.nn.softplus(x) - jax.nn.softplus(-x)
    else:
        y = -jnp.log(1.0 / x - 1.0)
        ldj = -jnp.log(x) - jnp.log(1.0 - x)
    ldj = ldj.reshape(x.shape[0], -1).sum(-1)
    return y, sldj + ldj


# ----------------------------- main ----------------------------------------

if __name__ == "__main__":
    key = jax.random.PRNGKey(0)
    kx, ks = jax.random.split(key)

    B, C, H, W = 2, 4, 16, 16
    x = jax.random.normal(kx, (B, C, H, W), dtype=jnp.float32)
    sldj = jax.random.normal(ks, (B,), dtype=jnp.float32)

    # forward direction
    y, sldj_out = sigmoid_flow(x, sldj, reverse=False)
    jax.block_until_ready((y, sldj_out))
    y_ref, sldj_ref = _reference(x, sldj, reverse=False)
    assert jnp.allclose(y, y_ref, atol=1e-5, rtol=1e-5), "fwd y mismatch"
    assert jnp.allclose(sldj_out, sldj_ref, atol=1e-4, rtol=1e-4), "fwd sldj mismatch"

    # reverse direction (inputs must be in (0, 1))
    x_rev = jax.nn.sigmoid(x)
    y_r, sldj_r = sigmoid_flow(x_rev, sldj, reverse=True)
    jax.block_until_ready((y_r, sldj_r))
    y_r_ref, sldj_r_ref = _reference(x_rev, sldj, reverse=True)
    assert jnp.allclose(y_r, y_r_ref, atol=1e-4, rtol=1e-4), "rev y mismatch"
    assert jnp.allclose(sldj_r, sldj_r_ref, atol=1e-3, rtol=1e-4), "rev sldj mismatch"

    print("KERNEL_OK")
</pallas_src>

<mosaic_0001>
module attributes {stable_mosaic.version = 11 : i64} {
  func.func @_sigmoid_fwd_kernel(%arg0: i32, %arg1: i32, %arg2: memref<1x8x128xf32, #tpu.memory_space<vmem>>, %arg3: memref<1x8x128xf32, #tpu.memory_space<vmem>>, %arg4: memref<1x1x8x128xf32, #tpu.memory_space<vmem>>) attributes {dimension_semantics = [#tpu.dimension_semantics<parallel>, #tpu.dimension_semantics<parallel>], iteration_bounds = array<i64: 2, 1>, scalar_prefetch = 0 : i64, scratch_operands = 0 : i64, tpu.core_type = #tpu.core_type<tc>, window_params = [{transform_indices = @transform_0, window_bounds = array<i64: 1, 8, 128>}, {transform_indices = @transform_1, window_bounds = array<i64: 1, 8, 128>}, {transform_indices = @transform_2, window_bounds = array<i64: 1, 1, 8, 128>}]} {
    %c0 = arith.constant 0 : index
    %c0_0 = arith.constant 0 : index
    %c0_1 = arith.constant 0 : index
    %0 = vector.load %arg2[%c0, %c0_0, %c0_1] : memref<1x8x128xf32, #tpu.memory_space<vmem>>, vector<1x8x128xf32>
    %1 = math.absf %0 : vector<1x8x128xf32>
    %cst = arith.constant 0.000000e+00 : f32
    %2 = vector.broadcast %cst : f32 to vector<1x8x128xf32>
    %3 = arith.subf %2, %1 : vector<1x8x128xf32>
    %4 = math.exp %3 : vector<1x8x128xf32>
    %cst_2 = arith.constant 1.000000e+00 : f32
    %5 = vector.broadcast %cst_2 : f32 to vector<1x8x128xf32>
    %6 = arith.addf %5, %4 : vector<1x8x128xf32>
    %cst_3 = arith.constant 1.000000e+00 : f32
    %7 = vector.broadcast %cst_3 : f32 to vector<1x8x128xf32>
    %8 = arith.divf %7, %6 : vector<1x8x128xf32>
    %cst_4 = arith.constant 0.000000e+00 : f32
    %9 = vector.broadcast %cst_4 : f32 to vector<1x8x128xf32>
    %10 = arith.cmpf oge, %0, %9 : vector<1x8x128xf32>
    %11 = arith.mulf %4, %8 : vector<1x8x128xf32>
    %12 = arith.select %10, %8, %11 : vector<1x8x128xi1>, vector<1x8x128xf32>
    %c0_5 = arith.constant 0 : index
    %c0_6 = arith.constant 0 : index
    %c0_7 = arith.constant 0 : index
    %13 = vector.load %arg3[%c0_5, %c0_6, %c0_7] : memref<1x8x128xf32, #tpu.memory_space<vmem>>, vector<1x8x128xf32>
    tpu.vector_store %arg3[%c0_5, %c0_6, %c0_7], %12 {strides = array<i32>} : memref<1x8x128xf32, #tpu.memory_space<vmem>>, vector<1x8x128xf32>,
    %14 = math.log1p %4 : vector<1x8x128xf32>
    %cst_8 = arith.constant 2.000000e+00 : f32
    %15 = vector.broadcast %cst_8 : f32 to vector<1x8x128xf32>
    %16 = arith.mulf %15, %14 : vector<1x8x128xf32>
    %17 = arith.addf %1, %16 : vector<1x8x128xf32>
    %cst_9 = arith.constant 0.000000e+00 : f32
    %18 = vector.broadcast %cst_9 : f32 to vector<1x8x128xf32>
    %19 = arith.subf %18, %17 : vector<1x8x128xf32>
    %cst_10 = arith.constant dense<0.000000e+00> : vector<8x128xf32>
    %20 = vector.multi_reduction <add>, %19, %cst_10 [0] : vector<1x8x128xf32> to vector<8x128xf32>
    %21 = vector.shape_cast %20 : vector<8x128xf32> to vector<1x1x8x128xf32>
    %c0_11 = arith.constant 0 : index
    %c0_12 = arith.constant 0 : index
    %c0_13 = arith.constant 0 : index
    %c0_14 = arith.constant 0 : index
    %22 = vector.load %arg4[%c0_11, %c0_12, %c0_13, %c0_14] : memref<1x1x8x128xf32, #tpu.memory_space<vmem>>, vector<1x1x8x128xf32>
    tpu.vector_store %arg4[%c0_11, %c0_12, %c0_13, %c0_14], %21 {strides = array<i32>} : memref<1x1x8x128xf32, #tpu.memory_space<vmem>>, vector<1x1x8x128xf32>,
    return
  }
  func.func @transform_0(%arg0: i32, %arg1: i32) -> (i32, i32, i32) {
    %c0_i32 = arith.constant 0 : i32
    %c0_i32_0 = arith.constant 0 : i32
    return %arg0, %arg1, %c0_i32 : i32, i32, i32
  }
  func.func @transform_1(%arg0: i32, %arg1: i32) -> (i32, i32, i32) {
    %c0_i32 = arith.constant 0 : i32
    %c0_i32_0 = arith.constant 0 : i32
    return %arg0, %arg1, %c0_i32 : i32, i32, i32
  }
  func.func @transform_2(%arg0: i32, %arg1: i32) -> (i32, i32, i32, i32) {
    %c0_i32 = arith.constant 0 : i32
    %c0_i32_0 = arith.constant 0 : i32
    %c0_i32_1 = arith.constant 0 : i32
    return %arg0, %arg1, %c0_i32, %c0_i32_0 : i32, i32, i32, i32
  }
}

</mosaic_0001>

<bundles_post_ra>
// kernel: tpu_custom_call.1
= control target key start
LH: loop header
LB: loop body
LE: loop exit
PB: predicated region body
PF: predicated region fallthrough
CT: control target
= control target key end

     0   :  { %8 = vsyncpa [#allocation3], 0  ;;  %s790_s0 = inlined_call_operand.hbm [shape: f32[2,8,128], index: 0, kind: input, shape index: {}]   ;;  %s791_s1 = inlined_call_operand.hbm [shape: f32[2,8,128], index: 1, kind: output, shape index: {0}]   ;;  %s792_s2 = inlined_call_operand.hbm [shape: f32[2,1,8,128], index: 2, kind: output, shape index: {1}]  }
   0x1   :  { %10 = vsyncpa [#allocation3 + $0x1], 0 }
   0x2   :  { %11 = vsyncpa [#allocation4], 0 }
   0x3   :  { %13 = vsyncpa [#allocation4 + $0x1], 0 }
   0x4   :  { %14 = vsyncpa [#allocation7], 0 }
   0x5   :  { %16 = vsyncpa [#allocation7 + $0x1], 0  ;;  %s609_s9 = smov 0   ;;  %s611_s10 = smov 0  }
   0x6   :  { %s613_s11 = smov 0   ;;  %s615_s12 = smov 0  }
   0x7   :  { %s617_s13 = smov 0   ;;  %s619_s14 = smov 0  }
   0x8 LB: > { %s362_s15 = sadd.s32 4294967295, %s589_s14   ;;  %s363_s16 = sadd.s32 4294967294, %s589_s14   ;;  %s589_s14 = sphi %s619_s14, %s22_s14   ;;  %s585_s13 = sphi %s617_s13, %s804_s13   ;;  %s581_s12 = sphi %s615_s12, %s803_s12   ;;  %s577_s11 = sphi %s613_s11, %s802_s11   ;;  %s573_s10 = sphi %s611_s10, %s801_s10   ;;  %s569_s9 = sphi %s609_s9, %s800_s9  }
   0x9   : > { %s34_s17 = sadd.s32 1, %s585_s13  ;;  %s43_s18 = sadd.s32 1, %s577_s11 }
   0xa   : > { %p36_p0 = scmp.ge.s32.totalorder %s34_s17, 2  ;;  %p50_p1 = scmp.ne.s32.totalorder %s577_s11, %s573_s10 }
   0xb   : > { %p51_p2 = scmp.eq.s32.totalorder %s589_s14, 0  ;;  %p56_p3 = scmp.ne.s32.totalorder %s573_s10, %s569_s9 }
   0xc   : > { %s806_s17 = smov (%p36_p0, %s34_s17), 0  ;;  %p57_p5 = scmp.eq.s32.totalorder %s362_s15, 0 }
   0xd   : > { %p650_p4 = por %p51_p2, %p50_p1  ;;  %s38_s20 = ssub.s32 %s585_s13, %s806_s17 }
   0xe   : > { %p82_p6 = scmp.eq.s32.totalorder %s362_s15, 1  ;;  %p41_p7 = scmp.eq.s32.totalorder %s38_s20, 0 }
   0xf   : > { %p656_p8 = por %p57_p5, %p56_p3  ;;  %p88_p10 = scmp.eq.s32.totalorder %s363_s16, 1 }
  0x10   : > { %p660_p9 = por %p82_p6, %p50_p1  ;;  %p395_p13 = scmp.lt.s32.totalorder %s589_s14, 2 }
  0x11   : > { %s665_s23 = scalar_select %p41_p7, %s577_s11, %s43_s18  }
  0x12   : > { %p667_p11 = por %p88_p10, %p56_p3  ;;  %s136_s25 = sand.u32 1, %s577_s11  }
  0x13   : > { %s366_s26 = sshll.u32 %s136_s25, 3  ;;  %s367_s27 = sshll.u32 %s585_s13, 7 }
  0x14   : > { %s796_s24 = scalar_select %p667_p11, 1, 0 }
  0x15   : > { %s146_s30 = scalar_lea.hbm %s790_s0, %s367_s27  ;;  %s140_s3 = scalar_lea.vmem [#allocation2], %s366_s26 }
  0x16   : > { %s148_s4 = sshll.u32 %s140_s3, 4  ;;  %p680_p0 = pnand %p395_p13, %p650_p4  ;;  %s149_s4 = int_to_ptr.vmem [resolvable:$true] %s148_s4 }
  0x17   : > { %p368_p1 = scmp.ge.s32.totalorder %s589_s14, 1  ;;  %p153_p2 = scmp.lt.s32.totalorder %s589_s14, 3 }
  0x18   : > { %s137_s6 = scalar_lea.sflag [#allocation3], %s136_s25  ;;  %p453_p3 = pneg %p680_p0 }
  0x19   : > { %s464_s7 = scalar_lea.vmem %s149_s4, 128  ;;  %s591_s8 = smov [#allocation2]  }
  0x1a   : > { %p465_p5 = scmp.ne.s32.totalorder %s149_s4, %s464_s7  ;;  %s469_s15 = sshll.u32 %s591_s8, 4  ;;  %s470_s15 = int_to_ptr.vmem [resolvable:$false] %s469_s15 }
  0x1b   : > { %s471_s16 = scalar_lea.vmem %s470_s15, 256  ;;  %p472_p10 = scmp.lt.s32.totalorder %s149_s4, %s470_s15 }
  0x1c   : > { %p467_p6 = pnand %p465_p5, %p453_p3  ;;  %p473_p12 = scmp.lt.s32.totalorder %s471_s16, %s464_s7 }
  0x1e   : > { %p468_p7 = pneg %p467_p6  ;;  %p474_p4 = por %p473_p12, %p472_p10 }
  0x20   : > { %p475_p13 = pnand %p474_p4, %p468_p7 }
  0x22   : > { %478 = shalt.err (!%p475_p13)
}
  0x23   : > { %387 = dma.hbm_to_vmem [thread:$0]  (!%p680_p0), %s146_s30, 128, %s149_s4, %s137_s6  }
  0x24   : > { %p154_p11 = pnand %p368_p1, %p153_p2 }
  0x25   : > { %s695_s18 = sand.u32 (!%p154_p11), 1, %s573_s10  }
  0x26   : > { %157 = sbr.rel (%p154_p11) target bundleno = 120 (0x78), region = 24  ;;  %s698_s19 = sshll.u32 (!%p154_p11), %s695_s18, 3 }
  0x27   : > { %s160_s20 = scalar_lea.sflag (!%p154_p11), [#allocation3], %s695_s18  ;;  %s163_s25 = scalar_lea.vmem (!%p154_p11), [#allocation2], %s698_s19 }
  0x2b   : > { %556 = dma.done.wait (%p656_p8), %s160_s20, 128  }
  0x2c   : > { %558 = vsyncadd (%p656_p8), %s160_s20, 4294967168  ;;  %v189_v0 = vld [vmem:[%s163_s25] sm:$0xff]  ;;  %s181_s26 = scalar_lea.vmem [#allocation5], %s698_s19  ;;  %s374_s27 = sshll.u32 %s581_s12, 7 }
  0x2d   : > { %v190_v1 = vand.u32 2147483647, %v189_v0  ;;  %s235_s21 = sshll.u32 %s181_s26, 4  ;;  %vm197_vm0 = vcmp.ge.f32.partialorder %v189_v0, 0.0  ;;  %s715_s30 = scalar_lea.hbm %s791_s1, %s374_s27  ;;  %s708_s21 = int_to_ptr.vmem [resolvable:$true] %s235_s21 }
  0x2e   : > { %s188_s3 = scalar_lea.vmem [#allocation6], %s698_s19  ;;  %s216_s5 = scalar_lea.sflag [#allocation4], %s695_s18 }
  0x2f   : > { %v191_v2 = vsub.f32 0.0, %v190_v1  ;;  %s249_s4 = sshll.u32 %s188_s3, 4  ;;  %s479_s6 = scalar_lea.vmem %s708_s21, 128  ;;  %s741_s4 = int_to_ptr.vmem [resolvable:$true] %s249_s4 }
  0x30   : > { %p480_p8 = scmp.ne.s32.totalorder %s708_s21, %s479_s6  ;;  %s592_s7 = smov [#allocation5]  }
  0x31   : > { %v192_v3 = vmul.f32 1.442695, %v191_v2  ;;  %s483_s8 = sshll.u32 %s592_s7, 4  ;;  %s484_s8 = int_to_ptr.vmem [resolvable:$false] %s483_s8 }
  0x32   : > { %p481_p11 = pnand %p480_p8, %p660_p9  ;;  %s485_s15 = scalar_lea.vmem %s484_s8, 256 }
  0x33   : > { %445 = vpow2.f32 %v192_v3  ;;  %p486_p0 = scmp.lt.s32.totalorder %s708_s21, %s484_s8  ;;  %p487_p1 = scmp.lt.s32.totalorder %s485_s15, %s479_s6 }
  0x34   : > { %p482_p12 = pneg %p481_p11 }
  0x35   : > { %p488_p2 = por %p487_p1, %p486_p0 }
  0x37   : > { %p489_p3 = pnand %p488_p2, %p482_p12 }
  0x40   : > { %v446_v4 = vpop.eup %445 }
  0x41   : > { %v194_v5 = vadd.f32 1.0, %v446_v4  ;;  %v204_v6 = vmul.f32 -0.5, %v446_v4  ;;  %v207_v8 = vand.u32 2147483647, %v446_v4 }
  0x43   : > { %447 = vrcp.f32 %v194_v5  ;;  %v205_v7 = vadd.f32 1.0, %v204_v6  ;;  %vm208_vm1 = vcmp.lt.f32.partialorder %v207_v8, 0.0004427343 }
  0x44   : > { %449 = vlog2.f32 %v194_v5 }
  0x45   : > { %v206_v10 = vmul.f32 %v446_v4, %v205_v7 }
  0x50   : > { %v448_v9 = vpop.eup %447 }
  0x51   : > { %v450_v11 = vpop.eup %449  ;;  %v198_v12 = vmul.f32 %v448_v9, %v446_v4 }
  0x52   : > { %v203_v13 = vmul.f32 0.6931472, %v450_v11 }
  0x53   : > { %v199_v14 = vsel %vm197_vm0, %v448_v9, %v198_v12 }
  0x54   : > { %200 = vst [vmem:[%s181_s26] sm:$0xff] %v199_v14  ;;  %v209_v15 = vsel %vm208_vm1, %v206_v10, %v203_v13 }
  0x55   : > { %v210_v16 = vmul.f32 2.0, %v209_v15 }
  0x56   : > { %492 = shalt.err (!%p489_p3)
}
  0x57   : > { %s493_s16 = scalar_lea.hbm %s715_s30, 128  ;;  %s497_s26 = scalar_lea.hbm %s791_s1, 256 }
  0x58   : > { %p494_p5 = scmp.ne.s32.totalorder %s715_s30, %s493_s16  ;;  %p498_p10 = scmp.lt.s32.totalorder %s715_s30, %s791_s1 }
  0x59   : > { %p499_p4 = scmp.lt.s32.totalorder %s497_s26, %s493_s16 }
  0x5a   : > { %p495_p6 = pnand %p494_p5, %p660_p9 }
  0x5b   : > { %p500_p13 = por %p499_p4, %p498_p10 }
  0x5c   : > { %p496_p7 = pneg %p495_p6 }
  0x5e   : > { %p501_p8 = pnand %p500_p13, %p496_p7 }
  0x60   : > { %504 = shalt.err (!%p501_p8)
}
  0x61   : > { %380 = dma.vmem_to_hbm [thread:$0]  (%p660_p9), %s708_s21, 128, %s715_s30, %s216_s5   ;;  %v211_v17 = vadd.f32 %v210_v16, %v190_v1 }
  0x62   : > { %s247_s8 = scalar_lea.hbm %s792_s2, %s374_s27  ;;  %s221_s15 = scalar_lea.sflag [#allocation7], %s695_s18 }
  0x63   : > { %v212_v18 = vsub.f32 0.0, %v211_v17  ;;  %s505_s16 = scalar_lea.vmem %s741_s4, 128  ;;  %s593_s21 = smov [#allocation6]  }
  0x64   : > { %p506_p11 = scmp.ne.s32.totalorder %s741_s4, %s505_s16  ;;  %s509_s30 = sshll.u32 %s593_s21, 4  ;;  %s510_s30 = int_to_ptr.vmem [resolvable:$false] %s509_s30 }
  0x65   : > { %214 = vst [vmem:[%s188_s3] sm:$0xff] %v212_v18  ;;  %s511_s5 = scalar_lea.vmem %s510_s30, 256  ;;  %p512_p1 = scmp.lt.s32.totalorder %s741_s4, %s510_s30 }
  0x66   : > { %p507_p12 = pnand %p506_p11, %p660_p9  ;;  %p513_p2 = scmp.lt.s32.totalorder %s511_s5, %s505_s16 }
  0x68   : > { %p508_p0 = pneg %p507_p12  ;;  %p514_p3 = por %p513_p2, %p512_p1 }
  0x6a   : > { %p515_p5 = pnand %p514_p3, %p508_p0 }
  0x6c   : > { %518 = shalt.err (!%p515_p5)
}
  0x6d   : > { %s519_s12 = scalar_lea.hbm %s247_s8, 128  ;;  %s523_s27 = scalar_lea.hbm %s792_s2, 256 }
  0x6e   : > { %p520_p6 = scmp.ne.s32.totalorder %s247_s8, %s519_s12  ;;  %p524_p4 = scmp.lt.s32.totalorder %s247_s8, %s792_s2 }
  0x6f   : > { %p525_p13 = scmp.lt.s32.totalorder %s523_s27, %s519_s12 }
  0x70   : > { %p521_p7 = pnand %p520_p6, %p660_p9 }
  0x71   : > { %p526_p8 = por %p525_p13, %p524_p4 }
  0x72   : > { %p522_p10 = pneg %p521_p7 }
  0x74   : > { %p527_p11 = pnand %p526_p8, %p522_p10 }
  0x76   : > { %530 = shalt.err (!%p527_p11)
}
  0x77   : > { %381 = dma.vmem_to_hbm [thread:$0]  (%p660_p9), %s741_s4, 128, %s247_s8, %s221_s15  }
  0x78 PF: > { %s261_s25 = sand.u32 1, %s569_s9   ;;  %p798_p12 = scmp.ne.s32.totalorder %s796_s24, 0 }
  0x79   : > { %p799_p0 = scmp.ge.s32.totalorder %s589_s14, 2  ;;  %s262_s26 = scalar_lea.sflag [#allocation4], %s261_s25 }
  0x7b   : > { %p389_p1 = pnand %p799_p0, %p798_p12 }
  0x7d   : > { %p390_p2 = pneg %p389_p1 }
  0x7f   : > { %560 = dma.done.wait (%p390_p2), %s262_s26, 128  }
  0x80   : > { %562 = vsyncadd (%p390_p2), %s262_s26, 4294967168  ;;  %s271_s28 = scalar_lea.sflag [#allocation7], %s261_s25 }
  0x81   : > { %564 = dma.done.wait (%p390_p2), %s271_s28, 128  }
  0x82   : > { %566 = vsyncadd (%p390_p2), %s271_s28, 4294967168  ;;  %s22_s14 = sadd.s32 1, %s589_s14   ;;  %s800_s9 = smov %s573_s10 }
  0x83   : > { %p19_p3 = scmp.ge.s32.totalorder %s22_s14, 4   ;;  %s801_s10 = smov %s577_s11 }
  0x84   : > { %s802_s11 = smov %s665_s23  ;;  %s803_s12 = smov %s585_s13 }
  0x85   : > { %s804_s13 = smov %s806_s17  ;;  %21 = sbr.rel (!%p19_p3) target bundleno = 8 (0x8), region = 86 }
  0x8a   :  { %276 = vsyncpa [#allocation3], 1 }
  0x8b   :  { %278 = vsyncpa [#allocation3 + $0x1], 1 }
  0x8c   :  { %279 = vsyncpa [#allocation4], 1 }
  0x8d   :  { %281 = vsyncpa [#allocation4 + $0x1], 1 }
  0x8e   :  { %282 = vsyncpa [#allocation7], 1 }
  0x8f   :  { %284 = vsyncpa [#allocation7 + $0x1], 1 }

</bundles_post_ra>
